<compile_context>
chip_gen: v6e
topology: v6e:2x2x1
jax: 0.10.0
libtpu: 0.0.40
codegen_flags: <defaults>
</compile_context>

<pallas_src>
import jax
import jax.numpy as jnp
import numpy as np
from jax.experimental import pallas as pl
from jax.experimental.pallas import tpu as pltpu

INPUT_DIM = 32
HIDDEN_DIM = 32
SEQ_LEN = 8
N_CHILD = 2  # c_state / h_state always have exactly 2 rows in this module

_OP_LIST = ['+', '*', '/', '-']
_OP_TO_EMB = {'+': 'x_sum', '*': 'x_product', '/': 'x_division', '-': 'x_min'}


# ----------------------------------------------------------------------------
# Pallas kernel: whole-tree Tree-LSTM, one grid step per node (post-order)
# ----------------------------------------------------------------------------
def tree_lstm_kernel(xi_ref, li_ref, ri_ref,            # scalar prefetch (SMEM)
                     x_ref,                              # (1,1,D) per-node x row
                     w_ref, u_ref, b_ref,                # fused (D,4H),(H,4H),(1,4H)
                     c_init_ref, h_init_ref,             # (2,H) learnable init states
                     c_out_ref, h_out_ref,               # (1,H) root outputs
                     c_tab, h_tab):                      # VMEM state tables (slots,1,H)
    n = pl.program_id(0)
    H = HIDDEN_DIM

    # Slot layout: slots 0,1 hold the learnable init state rows; node k writes
    # its result to slot k+2.  Leaves reference slots (0,1); internal nodes
    # reference their children's slots.
    @pl.when(n == 0)
    def _():
        c_tab[0] = c_init_ref[0:1, :]
        c_tab[1] = c_init_ref[1:2, :]
        h_tab[0] = h_init_ref[0:1, :]
        h_tab[1] = h_init_ref[1:2, :]

    li = li_ref[n]
    ri = ri_ref[n]
    c_state = jnp.concatenate([c_tab[li], c_tab[ri]], axis=0)   # (2, H)
    h_state = jnp.concatenate([h_tab[li], h_tab[ri]], axis=0)   # (2, H)
    x = x_ref[0]                                                # (1, D)

    # Two fused matmuls: x @ [W_i|W_o|W_u|W_f] and h_state @ [U_i|U_o|U_u|U_f].
    xW = jnp.dot(x, w_ref[...], preferred_element_type=jnp.float32)        # (1, 4H)
    hU = jnp.dot(h_state, u_ref[...], preferred_element_type=jnp.float32)  # (2, 4H)
    hU_sum = hU[0:1, :] + hU[1:2, :]   # == h_sum @ U_all (linearity), VALU add not XLU reduce

    pre = xW + b_ref[...]                                                  # (1, 4H)

    i = jax.nn.sigmoid(pre[:, 0 * H:1 * H] + hU_sum[:, 0 * H:1 * H])       # (1, H)
    o = jax.nn.sigmoid(pre[:, 1 * H:2 * H] + hU_sum[:, 1 * H:2 * H])       # (1, H)
    u = jnp.tanh(pre[:, 2 * H:3 * H] + hU_sum[:, 2 * H:3 * H])             # (1, H)
    # W_f(x)+b_f is (1,H); broadcasting against the per-child (2,H) U_f term
    # reproduces torch's .repeat(2, 1).
    f = jax.nn.sigmoid(pre[:, 3 * H:4 * H] + hU[:, 3 * H:4 * H])           # (2, H)

    fc = f * c_state                                                       # (2, H)
    c = i * u + (fc[0:1, :] + fc[1:2, :])                                  # (1, H)
    h = o * jnp.tanh(c)                                                    # (1, H)

    c_tab[n + 2] = c
    h_tab[n + 2] = h

    # Post-order schedule -> the last node is the root; last write wins.
    c_out_ref[...] = c
    h_out_ref[...] = h


@jax.jit
def tree_lstm_pallas(x_idx, li, ri, x_table, w_all, u_all, b_all, c_init, h_init):
    n_nodes = x_idx.shape[0]
    n_slots = n_nodes + 2
    D, H4 = INPUT_DIM, 4 * HIDDEN_DIM

    grid_spec = pltpu.PrefetchScalarGridSpec(
        num_scalar_prefetch=3,
        grid=(n_nodes,),
        in_specs=[
            # per-node x row gathered via scalar-prefetch-driven index_map
            pl.BlockSpec((1, 1, INPUT_DIM), lambda n, xi, li_r, ri_r: (xi[n], 0, 0)),
            # fused weights / biases / init states: constant index map -> DMA'd
            # once, VMEM-resident across the whole node grid (~50 KiB total)
            pl.BlockSpec((D, H4), lambda n, *_: (0, 0)),
            pl.BlockSpec((HIDDEN_DIM, H4), lambda n, *_: (0, 0)),
            pl.BlockSpec((1, H4), lambda n, *_: (0, 0)),
            pl.BlockSpec((2, HIDDEN_DIM), lambda n, *_: (0, 0)),
            pl.BlockSpec((2, HIDDEN_DIM), lambda n, *_: (0, 0)),
        ],
        out_specs=(pl.BlockSpec((1, HIDDEN_DIM), lambda n, *_: (0, 0)),
                   pl.BlockSpec((1, HIDDEN_DIM), lambda n, *_: (0, 0))),
        scratch_shapes=[pltpu.VMEM((n_slots, 1, HIDDEN_DIM), jnp.float32),
                        pltpu.VMEM((n_slots, 1, HIDDEN_DIM), jnp.float32)],
    )
    return pl.pallas_call(
        tree_lstm_kernel,
        out_shape=(jax.ShapeDtypeStruct((1, HIDDEN_DIM), jnp.float32),
                   jax.ShapeDtypeStruct((1, HIDDEN_DIM), jnp.float32)),
        grid_spec=grid_spec,
        compiler_params=pltpu.CompilerParams(
            dimension_semantics=("arbitrary",)),   # nodes have data dependencies
    )(x_idx, li, ri, x_table, w_all, u_all, b_all, c_init, h_init)


# ----------------------------------------------------------------------------
# Schedule construction (Python glue — no kernel launches here)
# ----------------------------------------------------------------------------
# TODO(synk): the recursive tree traversal / operator dispatch is data-dependent
# control flow with no clean Pallas equivalent; it only builds an integer
# post-order schedule that the single Pallas call consumes.
# TODO(synk): independent nodes within a tree level could be row-batched
# (M>=8 on the MXU) and the intra-level axis marked "parallel" for v7x's 2nd
# TensorCore; left as one node per grid step since dispatch fusion + resident
# weights already remove the dominant overhead at these tiny shapes.
def build_schedule(tree):
    """Post-order schedule. Returns (x_idx, left_slot, right_slot) int32 arrays."""
    x_idx, lslot, rslot = [], [], []

    def visit(node):
        if isinstance(node, int):          # leaf: token index, init-state slots
            xi, l, r = node, 0, 1
        else:
            op, left, right = node
            lpos = visit(left)
            rpos = visit(right)
            xi = SEQ_LEN + _OP_LIST.index(op)
            l, r = lpos + 2, rpos + 2
        pos = len(x_idx)
        x_idx.append(xi)
        lslot.append(l)
        rslot.append(r)
        return pos

    visit(tree)
    return (np.asarray(x_idx, np.int32),
            np.asarray(lslot, np.int32),
            np.asarray(rslot, np.int32))


def fuse_params(params, tokens):
    w_all = jnp.concatenate([params['W_i'], params['W_o'], params['W_u'], params['W_f']], axis=1)
    u_all = jnp.concatenate([params['U_i'], params['U_o'], params['U_u'], params['U_f']], axis=1)
    b_all = jnp.concatenate([params['b_i'], params['b_o'], params['b_u'], params['b_f']], axis=1)
    x_table = jnp.concatenate(
        [tokens] + [params[_OP_TO_EMB[op]].reshape(1, INPUT_DIM) for op in _OP_LIST],
        axis=0).reshape(-1, 1, INPUT_DIM)
    return w_all, u_all, b_all, x_table


# ----------------------------------------------------------------------------
# Pure-JAX reference (same math, unfused, per-node recursion) for verification
# ----------------------------------------------------------------------------
def node_forward_ref(x, c_state, h_state, p):
    h_sum = jnp.sum(h_state, axis=0, keepdims=True)
    i = jax.nn.sigmoid(x @ p['W_i'] + h_sum @ p['U_i'] + p['b_i'])
    o = jax.nn.sigmoid(x @ p['W_o'] + h_sum @ p['U_o'] + p['b_o'])
    u = jnp.tanh(x @ p['W_u'] + h_sum @ p['U_u'] + p['b_u'])
    f = jax.nn.sigmoid(x @ p['W_f'] + h_state @ p['U_f'] + p['b_f'])
    c = i * u + jnp.sum(f * c_state, axis=0, keepdims=True)
    h = o * jnp.tanh(c)
    return c, h


def forward_tree_ref(node, tokens, params):
    if isinstance(node, int):  # leaf: token index
        x = tokens[node].reshape(1, INPUT_DIM)
        c_state = params['c_init_state']
        h_state = params['h_init_state']
    else:
        op, left, right = node
        c_l, h_l = forward_tree_ref(left, tokens, params)
        c_r, h_r = forward_tree_ref(right, tokens, params)
        c_state = jnp.concatenate((c_l, c_r), axis=0)
        h_state = jnp.concatenate((h_l, h_r), axis=0)
        x = params[_OP_TO_EMB[op]].reshape(1, INPUT_DIM)
    return node_forward_ref(x, c_state, h_state, params)


# ----------------------------------------------------------------------------
# Parameter init (deterministic; mimics nn.Linear / module __init__ shapes)
# ----------------------------------------------------------------------------
def init_params(key):
    keys = jax.random.split(key, 12)
    bound_in = 1.0 / np.sqrt(INPUT_DIM)
    bound_h = 1.0 / np.sqrt(HIDDEN_DIM)

    def lw(k, din, dout, bound):
        # stored transposed: (in, out)
        return jax.random.uniform(k, (din, dout), jnp.float32, -bound, bound)

    return {
        'W_i': lw(keys[0], INPUT_DIM, HIDDEN_DIM, bound_in),
        'W_o': lw(keys[1], INPUT_DIM, HIDDEN_DIM, bound_in),
        'W_u': lw(keys[2], INPUT_DIM, HIDDEN_DIM, bound_in),
        'W_f': lw(keys[3], INPUT_DIM, HIDDEN_DIM, bound_in),
        'U_i': lw(keys[4], HIDDEN_DIM, HIDDEN_DIM, bound_h),
        'U_o': lw(keys[5], HIDDEN_DIM, HIDDEN_DIM, bound_h),
        'U_u': lw(keys[6], HIDDEN_DIM, HIDDEN_DIM, bound_h),
        'U_f': lw(keys[7], HIDDEN_DIM, HIDDEN_DIM, bound_h),
        'b_i': jnp.zeros((1, HIDDEN_DIM), jnp.float32),
        'b_o': jnp.zeros((1, HIDDEN_DIM), jnp.float32),
        'b_u': jnp.zeros((1, HIDDEN_DIM), jnp.float32),
        'b_f': jnp.zeros((1, HIDDEN_DIM), jnp.float32),
        # operator embeddings (ordered_op=False)
        'x_sum': jax.random.uniform(keys[8], (INPUT_DIM,), jnp.float32, -1.0, 1.0),
        'x_product': jax.random.uniform(keys[9], (INPUT_DIM,), jnp.float32, -1.0, 1.0),
        'x_division': jax.random.uniform(keys[10], (INPUT_DIM,), jnp.float32, -1.0, 1.0),
        'x_min': jax.random.uniform(keys[11], (INPUT_DIM,), jnp.float32, -1.0, 1.0),
        'c_init_state': jnp.zeros((2, HIDDEN_DIM), jnp.float32),
        'h_init_state': jnp.zeros((2, HIDDEN_DIM), jnp.float32),
    }


if __name__ == "__main__":
    key = jax.random.PRNGKey(0)
    k_param, k_tok = jax.random.split(key)
    params = init_params(k_param)
    tokens = jax.random.normal(k_tok, (SEQ_LEN, INPUT_DIM), jnp.float32)

    # expression tree: ((t0 + t1) * (t2 - t3)) / (t4 + t5)
    tree = ('/', ('*', ('+', 0, 1), ('-', 2, 3)), ('+', 4, 5))

    x_idx, lslot, rslot = build_schedule(tree)
    w_all, u_all, b_all, x_table = fuse_params(params, tokens)

    c_out, h_out = tree_lstm_pallas(
        jnp.asarray(x_idx), jnp.asarray(lslot), jnp.asarray(rslot),
        x_table, w_all, u_all, b_all,
        params['c_init_state'], params['h_init_state'])
    c_out = jax.block_until_ready(c_out)
    h_out = jax.block_until_ready(h_out)

    c_ref, h_ref = forward_tree_ref(tree, tokens, params)
    np.testing.assert_allclose(np.asarray(c_out), np.asarray(c_ref), rtol=1e-5, atol=2e-5)
    np.testing.assert_allclose(np.asarray(h_out), np.asarray(h_ref), rtol=1e-5, atol=2e-5)

    print("KERNEL_OK")
</pallas_src>

<mosaic_0001>
module attributes {stable_mosaic.version = 11 : i64} {
  func.func @tree_lstm_kernel(%arg0: i32, %arg1: memref<11xi32, #tpu.memory_space<smem>>, %arg2: memref<11xi32, #tpu.memory_space<smem>>, %arg3: memref<11xi32, #tpu.memory_space<smem>>, %arg4: memref<1x1x32xf32, #tpu.memory_space<vmem>>, %arg5: memref<32x128xf32, #tpu.memory_space<vmem>>, %arg6: memref<32x128xf32, #tpu.memory_space<vmem>>, %arg7: memref<1x128xf32, #tpu.memory_space<vmem>>, %arg8: memref<2x32xf32, #tpu.memory_space<vmem>>, %arg9: memref<2x32xf32, #tpu.memory_space<vmem>>, %arg10: memref<1x32xf32, #tpu.memory_space<vmem>>, %arg11: memref<1x32xf32, #tpu.memory_space<vmem>>, %arg12: memref<13x1x32xf32, #tpu.memory_space<vmem>>, %arg13: memref<13x1x32xf32, #tpu.memory_space<vmem>>) attributes {dimension_semantics = [#tpu.dimension_semantics<arbitrary>], iteration_bounds = array<i64: 11>, scalar_prefetch = 3 : i64, scratch_operands = 2 : i64, tpu.core_type = #tpu.core_type<tc>, window_params = [{transform_indices = @transform_0, window_bounds = array<i64: 1, 1, 32>}, {pipeline_mode = #tpu.pipeline_mode<synchronous>, transform_indices = @transform_1, window_bounds = array<i64: 32, 128>}, {pipeline_mode = #tpu.pipeline_mode<synchronous>, transform_indices = @transform_2, window_bounds = array<i64: 32, 128>}, {pipeline_mode = #tpu.pipeline_mode<synchronous>, transform_indices = @transform_3, window_bounds = array<i64: 1, 128>}, {pipeline_mode = #tpu.pipeline_mode<synchronous>, transform_indices = @transform_4, window_bounds = array<i64: 2, 32>}, {pipeline_mode = #tpu.pipeline_mode<synchronous>, transform_indices = @transform_5, window_bounds = array<i64: 2, 32>}, {pipeline_mode = #tpu.pipeline_mode<synchronous>, transform_indices = @transform_6, window_bounds = array<i64: 1, 32>}, {pipeline_mode = #tpu.pipeline_mode<synchronous>, transform_indices = @transform_7, window_bounds = array<i64: 1, 32>}]} {
    %c0_i32 = arith.constant 0 : i32
    %0 = arith.cmpi eq, %arg0, %c0_i32 : i32
    %1 = arith.extui %0 : i1 to i32
    %c0_i32_0 = arith.constant 0 : i32
    %2 = arith.cmpi ne, %1, %c0_i32_0 : i32
    scf.if %2 {
      %c0_30 = arith.constant 0 : index
      %c0_31 = arith.constant 0 : index
      %81 = vector.load %arg8[%c0_30, %c0_31] : memref<2x32xf32, #tpu.memory_space<vmem>>, vector<1x32xf32>
      %c0_32 = arith.constant 0 : index
      %c0_33 = arith.constant 0 : index
      %c0_34 = arith.constant 0 : index
      %82 = vector.load %arg12[%c0_32, %c0_33, %c0_34] : memref<13x1x32xf32, #tpu.memory_space<vmem>>, vector<1x1x32xf32>
      %83 = vector.shape_cast %82 : vector<1x1x32xf32> to vector<1x32xf32>
      %84 = vector.shape_cast %81 : vector<1x32xf32> to vector<1x1x32xf32>
      tpu.vector_store %arg12[%c0_32, %c0_33, %c0_34], %84 {strides = array<i32>} : memref<13x1x32xf32, #tpu.memory_space<vmem>>, vector<1x1x32xf32>,
      %c1 = arith.constant 1 : index
      %c0_35 = arith.constant 0 : index
      %85 = vector.load %arg8[%c1, %c0_35] : memref<2x32xf32, #tpu.memory_space<vmem>>, vector<1x32xf32>
      %c1_36 = arith.constant 1 : index
      %c0_37 = arith.constant 0 : index
      %c0_38 = arith.constant 0 : index
      %86 = vector.load %arg12[%c1_36, %c0_37, %c0_38] : memref<13x1x32xf32, #tpu.memory_space<vmem>>, vector<1x1x32xf32>
      %87 = vector.shape_cast %86 : vector<1x1x32xf32> to vector<1x32xf32>
      %88 = vector.shape_cast %85 : vector<1x32xf32> to vector<1x1x32xf32>
      tpu.vector_store %arg12[%c1_36, %c0_37, %c0_38], %88 {strides = array<i32>} : memref<13x1x32xf32, #tpu.memory_space<vmem>>, vector<1x1x32xf32>,
      %c0_39 = arith.constant 0 : index
      %c0_40 = arith.constant 0 : index
      %89 = vector.load %arg9[%c0_39, %c0_40] : memref<2x32xf32, #tpu.memory_space<vmem>>, vector<1x32xf32>
      %c0_41 = arith.constant 0 : index
      %c0_42 = arith.constant 0 : index
      %c0_43 = arith.constant 0 : index
      %90 = vector.load %arg13[%c0_41, %c0_42, %c0_43] : memref<13x1x32xf32, #tpu.memory_space<vmem>>, vector<1x1x32xf32>
      %91 = vector.shape_cast %90 : vector<1x1x32xf32> to vector<1x32xf32>
      %92 = vector.shape_cast %89 : vector<1x32xf32> to vector<1x1x32xf32>
      tpu.vector_store %arg13[%c0_41, %c0_42, %c0_43], %92 {strides = array<i32>} : memref<13x1x32xf32, #tpu.memory_space<vmem>>, vector<1x1x32xf32>,
      %c1_44 = arith.constant 1 : index
      %c0_45 = arith.constant 0 : index
      %93 = vector.load %arg9[%c1_44, %c0_45] : memref<2x32xf32, #tpu.memory_space<vmem>>, vector<1x32xf32>
      %c1_46 = arith.constant 1 : index
      %c0_47 = arith.constant 0 : index
      %c0_48 = arith.constant 0 : index
      %94 = vector.load %arg13[%c1_46, %c0_47, %c0_48] : memref<13x1x32xf32, #tpu.memory_space<vmem>>, vector<1x1x32xf32>
      %95 = vector.shape_cast %94 : vector<1x1x32xf32> to vector<1x32xf32>
      %96 = vector.shape_cast %93 : vector<1x32xf32> to vector<1x1x32xf32>
      tpu.vector_store %arg13[%c1_46, %c0_47, %c0_48], %96 {strides = array<i32>} : memref<13x1x32xf32, #tpu.memory_space<vmem>>, vector<1x1x32xf32>,
    } else {
    }
    %3 = arith.index_cast %arg0 : i32 to index
    %4 = memref.load %arg2[%3] : memref<11xi32, #tpu.memory_space<smem>>
    %5 = arith.index_cast %arg0 : i32 to index
    %6 = memref.load %arg3[%5] : memref<11xi32, #tpu.memory_space<smem>>
    %7 = arith.index_cast %4 : i32 to index
    %c0 = arith.constant 0 : index
    %c0_1 = arith.constant 0 : index
    %8 = vector.load %arg12[%7, %c0, %c0_1] : memref<13x1x32xf32, #tpu.memory_space<vmem>>, vector<1x1x32xf32>
    %9 = vector.shape_cast %8 : vector<1x1x32xf32> to vector<1x32xf32>
    %10 = arith.index_cast %6 : i32 to index
    %c0_2 = arith.constant 0 : index
    %c0_3 = arith.constant 0 : index
    %11 = vector.load %arg12[%10, %c0_2, %c0_3] : memref<13x1x32xf32, #tpu.memory_space<vmem>>, vector<1x1x32xf32>
    %12 = vector.shape_cast %11 : vector<1x1x32xf32> to vector<1x32xf32>
    %13 = tpu.concatenate %9, %12 in 0 : vector<1x32xf32>, vector<1x32xf32> -> vector<2x32xf32>
    %14 = arith.index_cast %4 : i32 to index
    %c0_4 = arith.constant 0 : index
    %c0_5 = arith.constant 0 : index
    %15 = vector.load %arg13[%14, %c0_4, %c0_5] : memref<13x1x32xf32, #tpu.memory_space<vmem>>, vector<1x1x32xf32>
    %16 = vector.shape_cast %15 : vector<1x1x32xf32> to vector<1x32xf32>
    %17 = arith.index_cast %6 : i32 to index
    %c0_6 = arith.constant 0 : index
    %c0_7 = arith.constant 0 : index
    %18 = vector.load %arg13[%17, %c0_6, %c0_7] : memref<13x1x32xf32, #tpu.memory_space<vmem>>, vector<1x1x32xf32>
    %19 = vector.shape_cast %18 : vector<1x1x32xf32> to vector<1x32xf32>
    %20 = tpu.concatenate %16, %19 in 0 : vector<1x32xf32>, vector<1x32xf32> -> vector<2x32xf32>
    %c0_8 = arith.constant 0 : index
    %c0_9 = arith.constant 0 : index
    %c0_10 = arith.constant 0 : index
    %21 = vector.load %arg4[%c0_8, %c0_9, %c0_10] : memref<1x1x32xf32, #tpu.memory_space<vmem>>, vector<1x1x32xf32>
    %22 = vector.shape_cast %21 : vector<1x1x32xf32> to vector<1x32xf32>
    %c0_11 = arith.constant 0 : index
    %c0_12 = arith.constant 0 : index
    %23 = vector.load %arg5[%c0_11, %c0_12] : memref<32x128xf32, #tpu.memory_space<vmem>>, vector<32x128xf32>
    %cst = arith.constant dense<0.000000e+00> : vector<1x128xf32>
    %24 = tpu.matmul %22, %23, %cst {dimension_numbers = #tpu.dot_dimension_numbers<[1], [0], [0], [1], [0, 0, 1, 1], [], []>} : vector<1x32xf32>, vector<32x128xf32>, vector<1x128xf32> -> vector<1x128xf32>
    %c0_13 = arith.constant 0 : index
    %c0_14 = arith.constant 0 : index
    %25 = vector.load %arg6[%c0_13, %c0_14] : memref<32x128xf32, #tpu.memory_space<vmem>>, vector<32x128xf32>
    %cst_15 = arith.constant dense<0.000000e+00> : vector<2x128xf32>
    %26 = tpu.matmul %20, %25, %cst_15 {dimension_numbers = #tpu.dot_dimension_numbers<[1], [0], [0], [1], [0, 0, 1, 1], [], []>} : vector<2x32xf32>, vector<32x128xf32>, vector<2x128xf32> -> vector<2x128xf32>
    %27 = vector.extract_strided_slice %26 {offsets = [0, 0], sizes = [1, 128], strides = [1, 1]} : vector<2x128xf32> to vector<1x128xf32>
    %28 = vector.extract_strided_slice %26 {offsets = [1, 0], sizes = [1, 128], strides = [1, 1]} : vector<2x128xf32> to vector<1x128xf32>
    %29 = arith.addf %27, %28 : vector<1x128xf32>
    %c0_16 = arith.constant 0 : index
    %c0_17 = arith.constant 0 : index
    %30 = vector.load %arg7[%c0_16, %c0_17] : memref<1x128xf32, #tpu.memory_space<vmem>>, vector<1x128xf32>
    %31 = arith.addf %24, %30 : vector<1x128xf32>
    %32 = vector.extract_strided_slice %31 {offsets = [0, 0], sizes = [1, 32], strides = [1, 1]} : vector<1x128xf32> to vector<1x32xf32>
    %33 = vector.extract_strided_slice %29 {offsets = [0, 0], sizes = [1, 32], strides = [1, 1]} : vector<1x128xf32> to vector<1x32xf32>
    %34 = arith.addf %32, %33 : vector<1x32xf32>
    %35 = arith.negf %34 : vector<1x32xf32>
    %36 = math.exp %35 : vector<1x32xf32>
    %cst_18 = arith.constant 1.000000e+00 : f32
    %37 = vector.broadcast %cst_18 : f32 to vector<1x32xf32>
    %38 = arith.addf %37, %36 : vector<1x32xf32>
    %39 = arith.divf %37, %38 : vector<1x32xf32>
    %40 = vector.extract_strided_slice %31 {offsets = [0, 32], sizes = [1, 32], strides = [1, 1]} : vector<1x128xf32> to vector<1x32xf32>
    %41 = vector.extract_strided_slice %29 {offsets = [0, 32], sizes = [1, 32], strides = [1, 1]} : vector<1x128xf32> to vector<1x32xf32>
    %42 = arith.addf %40, %41 : vector<1x32xf32>
    %43 = arith.negf %42 : vector<1x32xf32>
    %44 = math.exp %43 : vector<1x32xf32>
    %cst_19 = arith.constant 1.000000e+00 : f32
    %45 = vector.broadcast %cst_19 : f32 to vector<1x32xf32>
    %46 = arith.addf %45, %44 : vector<1x32xf32>
    %47 = arith.divf %45, %46 : vector<1x32xf32>
    %48 = vector.extract_strided_slice %31 {offsets = [0, 64], sizes = [1, 32], strides = [1, 1]} : vector<1x128xf32> to vector<1x32xf32>
    %49 = vector.extract_strided_slice %29 {offsets = [0, 64], sizes = [1, 32], strides = [1, 1]} : vector<1x128xf32> to vector<1x32xf32>
    %50 = arith.addf %48, %49 : vector<1x32xf32>
    %51 = math.tanh %50 : vector<1x32xf32>
    %52 = vector.extract_strided_slice %31 {offsets = [0, 96], sizes = [1, 32], strides = [1, 1]} : vector<1x128xf32> to vector<1x32xf32>
    %53 = vector.extract_strided_slice %26 {offsets = [0, 96], sizes = [2, 32], strides = [1, 1]} : vector<2x128xf32> to vector<2x32xf32>
    %54 = vector.broadcast %52 : vector<1x32xf32> to vector<2x32xf32>
    %55 = arith.addf %54, %53 : vector<2x32xf32>
    %56 = arith.negf %55 : vector<2x32xf32>
    %57 = math.exp %56 : vector<2x32xf32>
    %cst_20 = arith.constant 1.000000e+00 : f32
    %58 = vector.broadcast %cst_20 : f32 to vector<2x32xf32>
    %59 = arith.addf %58, %57 : vector<2x32xf32>
    %60 = arith.divf %58, %59 : vector<2x32xf32>
    %61 = arith.mulf %60, %13 : vector<2x32xf32>
    %62 = arith.mulf %39, %51 : vector<1x32xf32>
    %63 = vector.extract_strided_slice %61 {offsets = [0, 0], sizes = [1, 32], strides = [1, 1]} : vector<2x32xf32> to vector<1x32xf32>
    %64 = vector.extract_strided_slice %61 {offsets = [1, 0], sizes = [1, 32], strides = [1, 1]} : vector<2x32xf32> to vector<1x32xf32>
    %65 = arith.addf %63, %64 : vector<1x32xf32>
    %66 = arith.addf %62, %65 : vector<1x32xf32>
    %67 = math.tanh %66 : vector<1x32xf32>
    %68 = arith.mulf %47, %67 : vector<1x32xf32>
    %c2_i32 = arith.constant 2 : i32
    %69 = arith.addi %arg0, %c2_i32 : i32
    %70 = arith.index_cast %69 : i32 to index
    %c0_21 = arith.constant 0 : index
    %c0_22 = arith.constant 0 : index
    %71 = vector.load %arg12[%70, %c0_21, %c0_22] : memref<13x1x32xf32, #tpu.memory_space<vmem>>, vector<1x1x32xf32>
    %72 = vector.shape_cast %71 : vector<1x1x32xf32> to vector<1x32xf32>
    %73 = vector.shape_cast %66 : vector<1x32xf32> to vector<1x1x32xf32>
    tpu.vector_store %arg12[%70, %c0_21, %c0_22], %73 {strides = array<i32>} : memref<13x1x32xf32, #tpu.memory_space<vmem>>, vector<1x1x32xf32>,
    %c2_i32_23 = arith.constant 2 : i32
    %74 = arith.addi %arg0, %c2_i32_23 : i32
    %75 = arith.index_cast %74 : i32 to index
    %c0_24 = arith.constant 0 : index
    %c0_25 = arith.constant 0 : index
    %76 = vector.load %arg13[%75, %c0_24, %c0_25] : memref<13x1x32xf32, #tpu.memory_space<vmem>>, vector<1x1x32xf32>
    %77 = vector.shape_cast %76 : vector<1x1x32xf32> to vector<1x32xf32>
    %78 = vector.shape_cast %68 : vector<1x32xf32> to vector<1x1x32xf32>
    tpu.vector_store %arg13[%75, %c0_24, %c0_25], %78 {strides = array<i32>} : memref<13x1x32xf32, #tpu.memory_space<vmem>>, vector<1x1x32xf32>,
    %c0_26 = arith.constant 0 : index
    %c0_27 = arith.constant 0 : index
    %79 = vector.load %arg10[%c0_26, %c0_27] : memref<1x32xf32, #tpu.memory_space<vmem>>, vector<1x32xf32>
    tpu.vector_store %arg10[%c0_26, %c0_27], %66 {strides = array<i32>} : memref<1x32xf32, #tpu.memory_space<vmem>>, vector<1x32xf32>,
    %c0_28 = arith.constant 0 : index
    %c0_29 = arith.constant 0 : index
    %80 = vector.load %arg11[%c0_28, %c0_29] : memref<1x32xf32, #tpu.memory_space<vmem>>, vector<1x32xf32>
    tpu.vector_store %arg11[%c0_28, %c0_29], %68 {strides = array<i32>} : memref<1x32xf32, #tpu.memory_space<vmem>>, vector<1x32xf32>,
    return
  }
  func.func @transform_0(%arg0: i32, %arg1: memref<11xi32, #tpu.memory_space<smem>>, %arg2: memref<11xi32, #tpu.memory_space<smem>>, %arg3: memref<11xi32, #tpu.memory_space<smem>>) -> (i32, i32, i32) {
    %0 = arith.index_cast %arg0 : i32 to index
    %1 = memref.load %arg1[%0] : memref<11xi32, #tpu.memory_space<smem>>
    %c0_i32 = arith.constant 0 : i32
    %c0_i32_0 = arith.constant 0 : i32
    %c0_i32_1 = arith.constant 0 : i32
    return %1, %c0_i32, %c0_i32_0 : i32, i32, i32
  }
  func.func @transform_1(%arg0: i32, %arg1: memref<11xi32, #tpu.memory_space<smem>>, %arg2: memref<11xi32, #tpu.memory_space<smem>>, %arg3: memref<11xi32, #tpu.memory_space<smem>>) -> (i32, i32) {
    %c0_i32 = arith.constant 0 : i32
    %c0_i32_0 = arith.constant 0 : i32
    %c0_i32_1 = arith.constant 0 : i32
    return %c0_i32, %c0_i32_0 : i32, i32
  }
  func.func @transform_2(%arg0: i32, %arg1: memref<11xi32, #tpu.memory_space<smem>>, %arg2: memref<11xi32, #tpu.memory_space<smem>>, %arg3: memref<11xi32, #tpu.memory_space<smem>>) -> (i32, i32) {
    %c0_i32 = arith.constant 0 : i32
    %c0_i32_0 = arith.constant 0 : i32
    %c0_i32_1 = arith.constant 0 : i32
    return %c0_i32, %c0_i32_0 : i32, i32
  }
  func.func @transform_3(%arg0: i32, %arg1: memref<11xi32, #tpu.memory_space<smem>>, %arg2: memref<11xi32, #tpu.memory_space<smem>>, %arg3: memref<11xi32, #tpu.memory_space<smem>>) -> (i32, i32) {
    %c0_i32 = arith.constant 0 : i32
    %c0_i32_0 = arith.constant 0 : i32
    %c0_i32_1 = arith.constant 0 : i32
    return %c0_i32, %c0_i32_0 : i32, i32
  }
  func.func @transform_4(%arg0: i32, %arg1: memref<11xi32, #tpu.memory_space<smem>>, %arg2: memref<11xi32, #tpu.memory_space<smem>>, %arg3: memref<11xi32, #tpu.memory_space<smem>>) -> (i32, i32) {
    %c0_i32 = arith.constant 0 : i32
    %c0_i32_0 = arith.constant 0 : i32
    %c0_i32_1 = arith.constant 0 : i32
    return %c0_i32, %c0_i32_0 : i32, i32
  }
  func.func @transform_5(%arg0: i32, %arg1: memref<11xi32, #tpu.memory_space<smem>>, %arg2: memref<11xi32, #tpu.memory_space<smem>>, %arg3: memref<11xi32, #tpu.memory_space<smem>>) -> (i32, i32) {
    %c0_i32 = arith.constant 0 : i32
    %c0_i32_0 = arith.constant 0 : i32
    %c0_i32_1 = arith.constant 0 : i32
    return %c0_i32, %c0_i32_0 : i32, i32
  }
  func.func @transform_6(%arg0: i32, %arg1: memref<11xi32, #tpu.memory_space<smem>>, %arg2: memref<11xi32, #tpu.memory_space<smem>>, %arg3: memref<11xi32, #tpu.memory_space<smem>>) -> (i32, i32) {
    %c0_i32 = arith.constant 0 : i32
    %c0_i32_0 = arith.constant 0 : i32
    %c0_i32_1 = arith.constant 0 : i32
    return %c0_i32, %c0_i32_0 : i32, i32
  }
  func.func @transform_7(%arg0: i32, %arg1: memref<11xi32, #tpu.memory_space<smem>>, %arg2: memref<11xi32, #tpu.memory_space<smem>>, %arg3: memref<11xi32, #tpu.memory_space<smem>>) -> (i32, i32) {
    %c0_i32 = arith.constant 0 : i32
    %c0_i32_0 = arith.constant 0 : i32
    %c0_i32_1 = arith.constant 0 : i32
    return %c0_i32, %c0_i32_0 : i32, i32
  }
}

</mosaic_0001>

<bundles_post_ra>
// kernel: tree_lstm_pallas.1
= control target key start
LH: loop header
LB: loop body
LE: loop exit
PB: predicated region body
PF: predicated region fallthrough
CT: control target
= control target key end

     0   :  { %s1056_s13 = smov [#allocation5]   ;;  %s1324_s0 = inlined_call_operand.hbm [shape: s32[11], index: 0, kind: input, shape index: {}]   ;;  %s1325_s3 = inlined_call_operand.hbm [shape: f32[12,1,32], index: 3, kind: input, shape index: {}]   ;;  %s1326_s4 = inlined_call_operand.hbm [shape: f32[32,128], index: 4, kind: input, shape index: {}]   ;;  %s1327_s5 = inlined_call_operand.hbm [shape: f32[32,128], index: 5, kind: input, shape index: {}]   ;;  %s1328_s6 = inlined_call_operand.vmem [shape: f32[1,128], index: 6, kind: input, shape index: {}]   ;;  %s1329_s7 = inlined_call_operand.vmem [shape: f32[2,32], index: 7, kind: input, shape index: {}]   ;;  %s1330_s8 = inlined_call_operand.vmem [shape: f32[2,32], index: 8, kind: input, shape index: {}]   ;;  %s1331_s9 = inlined_call_operand.hbm [shape: f32[1,32], index: 9, kind: output, shape index: {0}]   ;;  %s1332_s10 = inlined_call_operand.hbm [shape: f32[1,32], index: 10, kind: output, shape index: {1}]   ;;  %s1333_s1 = inlined_call_operand.vmem [shape: s32[11], index: 1, kind: input, shape index: {}]   ;;  %s1334_s2 = inlined_call_operand.hbm [shape: s32[11], index: 2, kind: input, shape index: {}]  }
   0x1   :  { %17 = dma.hbm_to_smem %s1324_s0, 16, %s1056_s13, [#allocation4] }
   0x2   :  { %s18_s18 = sshll.u32 %s1333_s1, 4  ;;  %s19_s18 = int_to_ptr.vmem [resolvable:$true] %s18_s18 }
   0x3   :  { %s858_s19 = scalar_lea.vmem %s19_s18, 16  ;;  %p863_p1 = scmp.lt.s32.totalorder %s19_s18, %s19_s18 }
   0x4   :  { %p859_p0 = scmp.ne.s32.totalorder %s19_s18, %s858_s19  ;;  %p864_p2 = scmp.lt.s32.totalorder %s858_s19, %s858_s19 }
   0x6   :  { %p865_p3 = por %p864_p2, %p863_p1 }
   0x8   :  { %p866_p4 = pnand %p865_p3, %p859_p0 }
   0xa   :  { %869 = shalt.err (!%p866_p4)  }
   0xb   :  { %s1057_s20 = smov [#allocation6]   ;;  %s1058_s21 = smov [#allocation7]  }
   0xc   :  { %21 = dma.vmem_to_smem %s19_s18, 16, %s1057_s20, [#allocation4] }
   0xd   :  { %23 = dma.hbm_to_smem %s1334_s2, 16, %s1058_s21, [#allocation4] }
   0xe   :  { %1022 = dma.done.wait [#allocation4], 48 }
   0xf   :  { %1023 = vsyncadd [#allocation4], 4294967248 }
  0x10   :  { %25 = sfence }
  0x11   :  { %26 = vsyncpa [#allocation9], 0 }
  0x12   :  { %28 = vsyncpa [#allocation9 + $0x1], 0 }
  0x13   :  { %29 = vsyncpa [#allocation12], 0 }
  0x14   :  { %30 = vsyncpa [#allocation10], 0 }
  0x15   :  { %31 = vsyncpa [#allocation16], 0  ;;  %s1135_s0 = smov 0   ;;  %s1137_s1 = smov 0  }
  0x16   :  { %s1139_s24 = smov 0   ;;  %s1141_s25 = smov 0  }
  0x17 LB: > { %s1154_s2 = sadd.s32 4294967295, %s1054_s25   ;;  %p59_p5 = scmp.ne.s32.totalorder %s1046_s1, %s1042_s0  ;;  %s1054_s25 = sphi %s1141_s25, %s1350_s25   ;;  %s1050_s24 = sphi %s1139_s24, %s1349_s24   ;;  %s1046_s1 = sphi %s1137_s1, %s1348_s1   ;;  %s1042_s0 = sphi %s1135_s0, %s1347_s0  }
  0x18   : > { %p1335_p6 = scmp.eq.s32.totalorder %s1154_s2, 0  ;;  %p685_p7 = scmp.ge.s32.totalorder %s1054_s25, 1 }
  0x19   : > { %p217_p8 = scmp.lt.s32.totalorder %s1054_s25, 12  ;;  %s1059_s28 = smov [#allocation11]  }
  0x1a   : > { %p1163_p10 = por %p1335_p6, %p59_p5  ;;  %s229_s29 = sshll.u32 %s1059_s28, 4  ;;  %s230_s29 = int_to_ptr.vmem [resolvable:$true] %s229_s29 }
  0x1b   : > { %p1167_p11 = pnand %p685_p7, %p217_p8  ;;  %s1060_s11 = smov [#allocation13]  }
  0x1c   : > { %s1338_s26 = scalar_select %p1163_p10, 1, 0 }
  0x1d   : > { %s1339_s27 = scalar_select %p1167_p11, 1, 0 }
  0x1e   : > { %p770_p12 = pneg %p1167_p11  ;;  %s242_s12 = sshll.u32 %s1060_s11, 4  ;;  %s243_s12 = int_to_ptr.vmem [resolvable:$true] %s242_s12 }
  0x1f   : > { %s889_s13 = scalar_lea.vmem %s230_s29, 512  ;;  %p897_p4 = scmp.lt.s32.totalorder %s230_s29, %s230_s29 }
  0x20   : > { %p1175_p13 = pnand %p770_p12, %p1335_p6  ;;  %p890_p1 = scmp.ne.s32.totalorder %s230_s29, %s889_s13 }
  0x21   : > { %p898_p5 = scmp.lt.s32.totalorder %s889_s13, %s889_s13 }
  0x22   : > { %p880_p0 = pneg %p1175_p13 }
  0x23   : > { %p899_p7 = por %p898_p5, %p897_p4 }
  0x24   : > { %p892_p2 = pnand %p890_p1, %p880_p0 }
  0x26   : > { %p893_p3 = pneg %p892_p2 }
  0x28   : > { %p900_p8 = pnand %p899_p7, %p893_p3 }
  0x2a   : > { %903 = shalt.err (!%p900_p8)
}
  0x2b   : > { %s1061_s14 = smov 128   ;;  %s1062_s15 = smov 8  }
  0x2c   : > { %773 = dma.hbm_to_vmem [thread:$0]  (!%p1175_p13), %s1326_s4, 512, %s230_s29, [#allocation12], %s1061_s14, %s1061_s14, %s1062_s15  }
  0x2d   : > { %s915_s18 = scalar_lea.vmem %s243_s12, 512  ;;  %p923_p9 = scmp.lt.s32.totalorder %s243_s12, %s243_s12 }
  0x2e   : > { %p916_p12 = scmp.ne.s32.totalorder %s243_s12, %s915_s18  ;;  %p924_p6 = scmp.lt.s32.totalorder %s915_s18, %s915_s18 }
  0x30   : > { %p918_p1 = pnand %p916_p12, %p880_p0  ;;  %p925_p4 = por %p924_p6, %p923_p9 }
  0x32   : > { %p919_p2 = pneg %p918_p1 }
  0x34   : > { %p926_p3 = pnand %p925_p4, %p919_p2 }
  0x36   : > { %929 = shalt.err (!%p926_p3)
}
  0x37   : > { %776 = dma.hbm_to_vmem [thread:$0]  (!%p1175_p13), %s1327_s5, 512, %s243_s12, [#allocation12], %s1061_s14, %s1061_s14, %s1062_s15  }
  0x38   : > { %s1198_s21 = sadd.s32 1, %s1054_s25   ;;  %s41_s22 = sld [smem:[#allocation5 + %s1054_s25]] }
  0x39   : > { %s42_s23 = sld [smem:[#allocation5 + %s1198_s21]]  ;;  %p53_p6 = scmp.ne.s32.totalorder %s1050_s24, %s1046_s1 }
  0x3a   : > { %p54_p9 = scmp.eq.s32.totalorder %s1054_s25, 0  ;;  %s46_s0 = sadd.s32 1, %s1050_s24 }
  0x3b   : > { %p785_p5 = scmp.lt.s32.totalorder %s1054_s25, 11  ;;  %s265_s30 = sand.u32 1, %s1050_s24  }
  0x3c   : > { %p55_p0 = por %p54_p9, %p53_p6  ;;  %s268_s15 = scalar_lea.vmem [#allocation8], %s265_s30 }
  0x3d   : > { %s276_s16 = sshll.u32 %s268_s15, 4  ;;  %s1216_s16 = int_to_ptr.vmem [resolvable:$true] %s276_s16 }
  0x3e   : > { %s754_s28 = scalar_select %p55_p0, [#allocation5], [#allocation17] }
  0x3f   : > { %s43_s29 = ssub.s32 %s41_s22, %s42_s23  ;;  %p1212_p13 = pnand %p785_p5, %p55_p0 }
  0x40   : > { %p44_p7 = scmp.eq.s32.totalorder %s43_s29, 0  ;;  %s1352_s28 = smov (!%p785_p5, %s754_s28), [#allocation18] }
  0x41   : > { %s755_s11 = scalar_select %p55_p0, %s1054_s25, 0 }
  0x42   : > { %s1210_s13 = scalar_select %p44_p7, %s1050_s24, %s46_s0  }
  0x43   : > { %s1354_s11 = smov (!%p785_p5, %s755_s11), 0  ;;  %s266_s22 = scalar_lea.sflag [#allocation9], %s265_s30 }
  0x44   : > { %s269_s14 = sld [smem:[%s1352_s28 + %s1354_s11]]  ;;  %p932_p12 = pneg %p1212_p13 }
  0x45   : > { %s935_s28 = scalar_lea.hbm %s1325_s3, 192 }
  0x4a   : > { %s689_s17 = sshll.u32 %s269_s14, 4 }
  0x4b   : > { %s274_s20 = scalar_lea.hbm %s1325_s3, %s689_s17 }
  0x4c   : > { %s930_s23 = scalar_lea.hbm %s274_s20, 16  ;;  %p936_p4 = scmp.lt.s32.totalorder %s274_s20, %s1325_s3 }
  0x4d   : > { %p931_p8 = scmp.ne.s32.totalorder %s274_s20, %s930_s23  ;;  %p937_p3 = scmp.lt.s32.totalorder %s935_s28, %s930_s23 }
  0x4f   : > { %p933_p1 = pnand %p932_p12, %p931_p8  ;;  %p938_p6 = por %p937_p3, %p936_p4 }
  0x51   : > { %p934_p2 = pneg %p933_p1 }
  0x53   : > { %p939_p9 = pnand %p938_p6, %p934_p2 }
  0x55   : > { %942 = shalt.err (!%p939_p9)
}
  0x56   : > { %s943_s30 = scalar_lea.vmem %s1216_s16, 16  ;;  %s1063_s14 = smov [#allocation8]  }
  0x57   : > { %p944_p0 = scmp.ne.s32.totalorder %s1216_s16, %s943_s30  ;;  %s948_s17 = sshll.u32 %s1063_s14, 4  ;;  %s949_s17 = int_to_ptr.vmem [resolvable:$false] %s948_s17 }
  0x58   : > { %s950_s18 = scalar_lea.vmem %s949_s17, 32  ;;  %p951_p8 = scmp.lt.s32.totalorder %s1216_s16, %s949_s17 }
  0x59   : > { %p946_p5 = pnand %p944_p0, %p932_p12  ;;  %p952_p1 = scmp.lt.s32.totalorder %s950_s18, %s943_s30 }
  0x5b   : > { %p947_p7 = pneg %p946_p5  ;;  %p953_p10 = por %p952_p1, %p951_p8 }
  0x5d   : > { %p954_p11 = pnand %p953_p10, %p947_p7 }
  0x5f   : > { %957 = shalt.err (!%p954_p11)
}
  0x60   : > { %782 = dma.hbm_to_vmem [thread:$0]  (!%p1212_p13), %s274_s20, 16, %s1216_s16, %s266_s22  }
  0x61   : > { %p1342_p2 = scmp.ne.s32.totalorder %s1339_s27, 0 }
  0x62   : > { %s287_s19 = sand.u32 (!%p1342_p2), 1, %s1046_s1   ;;  %p1343_p12 = scmp.ne.s32.totalorder (!%p1342_p2), %s1338_s26, 0 }
  0x63   : > { %285 = sbr.rel (%p1342_p2) target bundleno = 736 (0x2e0), region = 44  ;;  %s288_s23 = scalar_lea.sflag (!%p1342_p2), [#allocation9], %s287_s19 }
  0x64   : > { %s1238_s0 = scalar_lea.vmem (!%p1342_p2), [#allocation8], %s287_s19 }
  0x68   : > { %1025 = dma.done.wait (%p1343_p12), %s288_s23, 16  }
  0x69   : > { %1027 = vsyncadd (%p1343_p12), %s288_s23, 4294967280  ;;  %p1344_p10 = scmp.eq.s32.totalorder %s1154_s2, 0 }
  0x6b   : > { %1029 = dma.done.wait (%p1344_p10), [#allocation12], 1024   ;;  %p1345_p11 = pmov %p1344_p10 }
  0x6c   : > { %p1346_p13 = scmp.ne.s32.totalorder %s1154_s2, 0 }
  0x6d   : > { %1031 = vsyncadd (%p1345_p11), [#allocation12], 4294966272 }
  0x6e   : > { %327 = sbr.rel (%p1346_p13) target bundleno = 119 (0x77), region = 60 }
  0x73   : > { %v328_v0 = vld [vmem:[%s1329_s7] sm:$0x1]  ;;  %vm329_vm0 = vcmask 253952   ;;  %v331_v1 = vld [vmem:[%s1329_s7 + $0x1] sm:$0x1] }
  0x74   : > { %330 = vst.msk [vmem:[#allocation2] sm:$0x1] %vm329_vm0, %v328_v0  ;;  %333 = vst.msk [vmem:[#allocation2 + $0x1] sm:$0x1] %vm329_vm0, %v331_v1  ;;  %v334_v2 = vld [vmem:[%s1330_s8] sm:$0x1] }
  0x75   : > { %v336_v3 = vld [vmem:[%s1330_s8 + $0x1] sm:$0x1]  ;;  %335 = vst.msk [vmem:[#allocation3] sm:$0x1] %vm329_vm0, %v334_v2 }
  0x76   : > { %338 = vst.msk [vmem:[#allocation3 + $0x1] sm:$0x1] %vm329_vm0, %v336_v3 }
  0x77 PF: > { %v372_v4 = vld [vmem:[#allocation13 + $0x18] sm:$0xff]  ;;  %s1263_s11 = sld [smem:[#allocation6 + %s1154_s2]]  ;;  %v1064_v6 = vmov 0.0   ;;  %v371_v7 = vld [vmem:[#allocation13 + $0x10] sm:$0xff]  ;;  %v370_v9 = vld [vmem:[#allocation13 + $0x8] sm:$0xff]  ;;  %vm351_vm1 = vcmask 1040384   ;;  %v533_v20 = vlaneseq }
  0x78   : > { %v368_v5 = vld [vmem:[#allocation11 + $0x18] sm:$0xff]  ;;  %728 = vmatprep.subr.mxu0 %v1064_v6  ;;  %739 = vmatprep.subr.mxu1 %v1064_v6  ;;  %v367_v8 = vld [vmem:[#allocation11 + $0x10] sm:$0xff]  ;;  %s1266_s15 = sld [smem:[#allocation7 + %s1154_s2]]  ;;  %v366_v10 = vld [vmem:[#allocation11 + $0x8] sm:$0xff]  ;;  %vm373_vm2 = vcmask 261120   ;;  %vm1065_vm3 = vmmov 0  }
  0x79   : > { %729 = vmatpush3.msra.mxu0 %v372_v4  ;;  %740 = vmatpush3.msra.mxu1 %v368_v5  ;;  %v369_v11 = vld [vmem:[#allocation13] sm:$0xff]  ;;  %s1066_s19 = smov 96   ;;  %v534_v21 = vshrl.u32 %v533_v20, 7  ;;  %s1067_s27 = smov 64   ;;  %vm571_vm4 = vcmask 253952  }
  0x7a   : > { %730 = vmatprep.subr.mxu0 %v1064_v6  ;;  %741 = vmatprep.subr.mxu1 %v1064_v6  ;;  %v365_v12 = vld [vmem:[#allocation11] sm:$0xff]  ;;  %s1068_s12 = smov 32   ;;  %s710_s16 = scalar_lea.vmem [#allocation2], %s1054_s25 }
  0x7b   : > { %731 = vmatpush3.msra.mxu0 %v371_v7  ;;  %742 = vmatpush3.msra.mxu1 %v367_v8  ;;  %v364_v13 = vld [vmem:[%s1238_s0] sm:$0x1]  ;;  %v535_v23 = vsub.s32 0, %v534_v21  ;;  %p788_p4 = scmp.eq.s32.totalorder %s1154_s2, 10  ;;  %s1069_s20 = smov [#allocation14]  }
  0x7c   : > { %732 = vmatprep.subr.mxu0 %v1064_v6  ;;  %743 = vmatprep.subr.mxu1 %v1064_v6  ;;  %v451_v22 = vld [vmem:[%s1328_s6] sm:$0x1]  ;;  %s588_s26 = sshll.u32 %s1069_s20, 4  ;;  %s589_s26 = int_to_ptr.vmem [resolvable:$true] %s588_s26 }
  0x7d   : > { %733 = vmatpush3.msra.mxu0 %v370_v9  ;;  %744 = vmatpush3.msra.mxu1 %v366_v10  ;;  %s353_s30 = scalar_lea.vmem [#allocation3], %s1263_s11  ;;  %s341_s14 = scalar_lea.vmem [#allocation2], %s1263_s11 }
  0x7e   : > { %734 = vmatprep.subr.mxu0 %v1064_v6  ;;  %745 = vmatprep.subr.mxu1 %v1064_v6  ;;  %v354_v14 = vld [vmem:[%s353_s30] sm:$0x1]  ;;  %s355_s17 = scalar_lea.vmem [#allocation3], %s1266_s15  ;;  %s343_s18 = scalar_lea.vmem [#allocation2], %s1266_s15 }
  0x7f   : > { %v342_v15 = vld [vmem:[%s341_s14] sm:$0x1]  ;;  %735 = vmatpush3.msra.mxu0 %v369_v11  ;;  %736 = vmatprep.mubr.msk.f32.mxu0 %vm1065_vm3, %v1064_v6  ;;  %s958_s22 = scalar_lea.vmem %s589_s26, 16  ;;  %s964_s29 = scalar_lea.vmem %s589_s26, 32 }
  0x80   : > { %v695_v16 = vld [vmem:[%s355_s17] ss:$0 sm:$0xff]  ;;  %746 = vmatpush3.msra.mxu1 %v365_v12  ;;  %747 = vmatprep.mubr.msk.f32.mxu1 %vm1065_vm3, %v1064_v6  ;;  %p959_p3 = scmp.ne.s32.totalorder %s589_s26, %s958_s22  ;;  %p965_p0 = scmp.lt.s32.totalorder %s589_s26, %s589_s26 }
  0x81   : > { %v694_v17 = vld [vmem:[%s343_s18] ss:$0 sm:$0xff]  ;;  %v363_v18 = vsel %vm351_vm1, %v354_v14, %v695_v16  ;;  %748 = vmatmul.mubr.msk.f32.vlgmr.msra.gmra.mxu1 %vm373_vm2, %v364_v13  ;;  %p966_p5 = scmp.lt.s32.totalorder %s964_s29, %s958_s22 }
  0x82   : > { %v352_v19 = vsel %vm351_vm1, %v342_v15, %v694_v17  ;;  %737 = vmatmul.mubr.msk.f32.vlgmr.msra.gmra.mxu0 %vm373_vm2, %v363_v18  ;;  %p960_p6 = pnand %p959_p3, %p788_p4 }
  0x83   : > { %545 = vrot.lane.b32.xlu0 %v352_v19, %s1066_s19  ;;  %p967_p7 = por %p966_p5, %p965_p0 }
  0x84   : > { %p961_p9 = pneg %p960_p6 }
  0x86   : > { %p968_p8 = pnand %p967_p7, %p961_p9 }
  0xf5   : > { %v546_v38 = vpop.permute.xlu0 %545 }
 0x141   : > { %v521_v25 = vpop.f32.mrf.mxu1 }
 0x142   : > { %v443_v24 = vpop.f32.mrf.mxu0  ;;  %v522_v27 = vadd.f32 %v521_v25, %v451_v22 }
 0x143   : > { %v448_v26 = vrot.slane %v443_v24, 1  ;;  %v749_v28 = vpop.f32.mrf.mxu1 }
 0x144   : > { %v738_v29 = vpop.f32.mrf.mxu0  ;;  %v536_v31 = vrot.slane %v522_v27, %v535_v23 }
 0x145   : > { %v450_v30 = vadd.f32 %v448_v26, %v443_v24 }
 0x146   : > { %v537_v33 = vadd.f32 %v536_v31, %v443_v24 }
 0x147   : > { %v525_v32 = vadd.f32 %v522_v27, %v450_v30 }
 0x148   : > { %v699_v34 = vmul.f32 -1.442695, %v537_v33 }
 0x149   : > { %838 = vtanh.f32 %v525_v32  ;;  %v698_v43 = vmul.f32 -1.442695, %v525_v32 }
 0x14a   : > { %840 = vpow2.f32 %v699_v34 }
 0x156   : > { %v839_v35 = vpop.eup %838 }
 0x157   : > { %550 = vrot.lane.b32.xlu0 %v839_v35, %s1067_s27  ;;  %v841_v36 = vpop.eup %840 }
 0x158   : > { %v541_v37 = vadd.f32 1.0, %v841_v36 }
 0x15a   : > { %842 = vrcp.f32 %v541_v37 }
 0x15b   : > { %844 = vpow2.f32 %v698_v43 }
 0x167   : > { %v843_v39 = vpop.eup %842 }
 0x168   : > { %v548_v40 = vmul.f32 %v843_v39, %v546_v38  ;;  %v845_v44 = vpop.eup %844 }
 0x169   : > { %v529_v45 = vadd.f32 1.0, %v845_v44 }
 0x16a   : > { %v555_v41 = vrot.slane %v548_v40, 1 }
 0x16b   : > { %846 = vrcp.f32 %v529_v45 }
 0x16c   : > { %v557_v42 = vadd.f32 %v555_v41, %v548_v40 }
 0x16e   : > { %559 = vrot.lane.b32.xlu1 %v557_v42, %s1068_s12 }
 0x178   : > { %v847_v47 = vpop.eup %846 }
 0x1c9   : > { %v551_v46 = vpop.permute.xlu0 %550 }
 0x1ca   : > { %v553_v48 = vmul.f32 %v847_v47, %v551_v46 }
 0x1e0   : > { %v560_v49 = vpop.permute.xlu1 %559 }
 0x1e1   : > { %v562_v50 = vadd.f32 %v560_v49, %v553_v48 }
 0x1e3   : > { %848 = vtanh.f32 %v562_v50  ;;  %713 = vst.msk [vmem:[%s710_s16 + $0x1] sm:$0x1] %vm571_vm4, %v562_v50  ;;  %579 = vst.msk [vmem:[#allocation14] sm:$0x1] %vm571_vm4, %v562_v50 }
 0x1f0   : > { %v849_v51 = vpop.eup %848 }
 0x1f1   : > { %565 = vrot.lane.b32.xlu1 %v849_v51, %s1068_s12 }
 0x1f2   : > { %971 = shalt.err (!%p968_p8)
}
 0x1f3   : > { %763 = dma.vmem_to_hbm [thread:$0]  (%p788_p4), %s589_s26, 16, %s1331_s9, [#allocation10]  }
 0x1f4   : > { %s1070_s15 = smov [#allocation15]   ;;  %s714_s14 = scalar_lea.vmem [#allocation3], %s1054_s25 }
 0x1f5   : > { %s599_s30 = sshll.u32 %s1070_s15, 4  ;;  %s600_s30 = int_to_ptr.vmem [resolvable:$true] %s599_s30 }
 0x1f6   : > { %s982_s17 = scalar_lea.vmem %s600_s30, 16  ;;  %s988_s18 = scalar_lea.vmem %s600_s30, 32 }
 0x1f7   : > { %p983_p1 = scmp.ne.s32.totalorder %s600_s30, %s982_s17  ;;  %p989_p10 = scmp.lt.s32.totalorder %s600_s30, %s600_s30 }
 0x1f8   : > { %p990_p11 = scmp.lt.s32.totalorder %s988_s18, %s982_s17 }
 0x1f9   : > { %p984_p2 = pnand %p983_p1, %p788_p4 }
 0x1fa   : > { %p991_p13 = por %p990_p11, %p989_p10 }
 0x1fb   : > { %p985_p12 = pneg %p984_p2 }
 0x1fd   : > { %p992_p3 = pnand %p991_p13, %p985_p12 }
 0x263   : > { %v566_v52 = vpop.permute.xlu1 %565 }
 0x264   : > { %v568_v53 = vmul.f32 %v847_v47, %v566_v52 }
 0x266   : > { %574 = vrot.lane.b32.xlu0 %v568_v53, %s1066_s19 }
 0x2d8   : > { %v575_v54 = vpop.permute.xlu0 %574 }
 0x2d9   : > { %717 = vst.msk [vmem:[%s714_s14 + $0x1] sm:$0x1] %vm571_vm4, %v575_v54  ;;  %580 = vst.msk [vmem:[#allocation15] sm:$0x1] %vm571_vm4, %v575_v54 }
 0x2da   : > { %995 = shalt.err (!%p992_p3)
}
 0x2db   : > { %765 = dma.vmem_to_hbm [thread:$0]  (%p788_p4), %s600_s30, 16, %s1332_s10, [#allocation16]  }
 0x2dc   : > { %1033 = dma.done.wait (%p788_p4), [#allocation10], 16  }
 0x2dd   : > { %1035 = vsyncadd (%p788_p4), [#allocation10], 4294967280 }
 0x2de   : > { %1037 = dma.done.wait (%p788_p4), [#allocation16], 16  }
 0x2df   : > { %1039 = vsyncadd (%p788_p4), [#allocation16], 4294967280 }
 0x2e0 PF: > { %p34_p6 = scmp.ge.s32.totalorder %s1198_s21, 13   ;;  %s1347_s0 = smov %s1046_s1 }
 0x2e1   : > { %s1348_s1 = smov %s1050_s24  ;;  %s1349_s24 = smov %s1210_s13 }
 0x2e2   : > { %s1350_s25 = smov %s1198_s21  ;;  %36 = sbr.rel (!%p34_p6) target bundleno = 23 (0x17), region = 109 }
 0x2e7   :  { %616 = vsyncpa [#allocation9], 1 }
 0x2e8   :  { %618 = vsyncpa [#allocation9 + $0x1], 1 }
 0x2e9   :  { %619 = vsyncpa [#allocation12], 1 }
 0x2ea   :  { %620 = vsyncpa [#allocation10], 1 }
 0x2eb   :  { %622 = vsyncpa [#allocation10 + $0x1], 1 }
 0x2ec   :  { %623 = vsyncpa [#allocation16], 1 }

</bundles_post_ra>
